<compile_context>
chip_gen: v5e
topology: v5e:2x2
jax: 0.10.0
libtpu: 0.0.40
codegen_flags: <defaults>
</compile_context>

<pallas_src>
import functools

import jax
import jax.numpy as jnp
from jax import lax
from jax.experimental import pallas as pl
from jax.experimental.pallas import tpu as pltpu

IGNORE_INDEX = -100


def _round_up(x, m):
    return (x + m - 1) // m * m


def _vmem_capacity_bytes():
    try:
        return int(pltpu.get_tpu_info().vmem_capacity_bytes)
    except Exception:
        return 128 << 20  # v5e / v6e default


def _choose_block_rows(V, in_itemsize, budget_bytes, max_rows=1024):
    # Per-row VMEM: 2 logit streams x 2 pipeline buffers x V x itemsize
    #               + ~6 f32 [rows, V] in-kernel intermediates.
    per_row = 4 * V * in_itemsize + 6 * V * 4
    rows = int(budget_bytes // per_row)
    rows = max(8, min(rows, max_rows))
    return (rows // 8) * 8


def _distill_loss_kernel(s_ref, t_ref, tgt_ref, out_ref, *,
                         temperature, temp_int, n_rows):
    """One row-block of the fused distillation loss.

    s_ref, t_ref : [TN, V] student / teacher logits (VMEM, any float dtype)
    tgt_ref      : [TN, 1] int32 shifted labels, -100 = ignore (VMEM)
    out_ref      : [1, 1, 128] f32 partial sums for this block:
                   lane 0 = kl_sum, lane 1 = clm_nll_sum, lane 2 = clm_valid_count
    """
    i = pl.program_id(0)

    s = s_ref[...].astype(jnp.float32)          # [TN, V]
    t = t_ref[...].astype(jnp.float32)          # [TN, V]
    tgt = tgt_ref[...]                          # [TN, 1] int32
    TN = s.shape[0]

    # Rows past the true N (block padding) contribute nothing.
    row_idx = i * TN + lax.broadcasted_iota(jnp.int32, (TN, 1), 0)
    row_valid = row_idx < n_rows                # [TN, 1]

    inv_t = 1.0 / temperature
    s_t = s * inv_t
    t_t = t * inv_t

    # ---- teacher: single exp pass reused for softmax and log-softmax ----
    t_max = jnp.max(t_t, axis=-1, keepdims=True)
    e_t = jnp.exp(t_t - t_max)                                   # exp pass 1
    sum_t = jnp.sum(e_t, axis=-1, keepdims=True)
    log_p_t = (t_t - t_max) - jnp.log(sum_t)                     # log_softmax(t/T)

    # ---- student (tempered): single exp pass ----
    s_max = jnp.max(s_t, axis=-1, keepdims=True)
    e_s = jnp.exp(s_t - s_max)                                   # exp pass 2
    sum_s = jnp.sum(e_s, axis=-1, keepdims=True)
    log_p_s = (s_t - s_max) - jnp.log(sum_s)                     # log_softmax(s/T)

    # KL row sums: softmax(t/T) = e_t / sum_t, so the division is a [TN,1] op (exact),
    # never a [TN,V] broadcast of a reciprocal.
    kl_rows = jnp.sum(e_t * (log_p_t - log_p_s), axis=-1, keepdims=True) / sum_t
    kl_sum = jnp.sum(jnp.where(row_valid, kl_rows, 0.0))

    # ---- student CLM cross-entropy (no temperature), ignore_index = -100 ----
    # max(s) = T * max(s/T) for T > 0 -> no second full-width max reduction.
    sm = temperature * s_max
    if temp_int is not None:
        # exp(s - sm) = exp(T*(s/T - s_max)) = e_s**T : VPU multiplies, no third exp.
        e_full = e_s
        for _ in range(temp_int - 1):
            e_full = e_full * e_s
    else:
        e_full = jnp.exp(s - sm)                                 # generic-T fallback
    lse = jnp.log(jnp.sum(e_full, axis=-1, keepdims=True)) + sm  # [TN, 1]

    valid = jnp.logical_and(tgt != IGNORE_INDEX, row_valid)      # [TN, 1]
    tgt_safe = jnp.where(valid, tgt, 0)
    col = lax.broadcasted_iota(jnp.int32, s.shape, 1)            # [TN, V]
    # Gather the label logit from the already-formed s_t strip: picked = T * s_t[label].
    picked = temperature * jnp.sum(jnp.where(col == tgt_safe, s_t, 0.0),
                                   axis=-1, keepdims=True)
    nll = lse - picked                                           # [TN, 1]
    clm_sum = jnp.sum(jnp.where(valid, nll, 0.0))
    clm_cnt = jnp.sum(valid.astype(jnp.float32))

    # Lane-dense partial-sum tile for this grid step (no cross-iteration accumulator,
    # so the grid axis can be "parallel" / megacore-sharded).
    lane = lax.broadcasted_iota(jnp.int32, (1, 1, 128), 2)
    out_ref[...] = (jnp.where(lane == 0, kl_sum, 0.0)
                    + jnp.where(lane == 1, clm_sum, 0.0)
                    + jnp.where(lane == 2, clm_cnt, 0.0))


def distiller_compute_loss(s_logits, t_logits, labels, *, temperature=2.0,
                           alpha_ce=0.7, alpha_clm=0.3, block_rows=None):
    """Mirrors Distiller.compute_loss given the two models' logits and labels.

    Logits may be bf16 (recommended upstream to halve HBM traffic); in-kernel math is f32.
    """
    B, S, V = s_logits.shape
    assert t_logits.shape == s_logits.shape

    # HF CausalLM loss shifts internally: position s predicts labels[s+1].
    shifted = jnp.concatenate(
        [labels[:, 1:], jnp.full((B, 1), IGNORE_INDEX, labels.dtype)], axis=1)

    N = B * S
    itemsize = jnp.dtype(s_logits.dtype).itemsize

    cap = _vmem_capacity_bytes()
    budget = min(int(cap * 0.55), 64 << 20)      # ~35 MiB on v7x, 64 MiB on v5e/v6e
    if block_rows is None:
        block_rows = _choose_block_rows(V, itemsize, budget)
    block_rows = _round_up(int(block_rows), 8)
    block_rows = min(block_rows, _round_up(N, 8))

    N_pad = _round_up(N, block_rows)
    num_blocks = N_pad // block_rows

    s_flat = s_logits.reshape(N, V)
    t_flat = t_logits.reshape(N, V)
    tgt_flat = shifted.reshape(N, 1).astype(jnp.int32)
    if N_pad != N:
        pad = N_pad - N
        s_flat = jnp.pad(s_flat, ((0, pad), (0, 0)))
        t_flat = jnp.pad(t_flat, ((0, pad), (0, 0)))
        tgt_flat = jnp.pad(tgt_flat, ((0, pad), (0, 0)),
                           constant_values=IGNORE_INDEX)

    # Explicit VMEM limit derived from the actual block footprint: keeps the large,
    # HBM-efficient tiles legal on v5e/v6e while staying well under v7x's 64 MiB.
    footprint = block_rows * (4 * V * itemsize + 6 * V * 4) + (2 << 20)
    vmem_limit = int(min(max(footprint, 16 << 20), cap - (8 << 20)))

    t_f = float(temperature)
    temp_int = int(t_f) if (t_f > 0 and t_f.is_integer() and t_f <= 4.0) else None

    partials = pl.pallas_call(
        functools.partial(_distill_loss_kernel,
                          temperature=t_f, temp_int=temp_int, n_rows=N),
        out_shape=jax.ShapeDtypeStruct((num_blocks, 1, 128), jnp.float32),
        grid_spec=pltpu.PrefetchScalarGridSpec(
            num_scalar_prefetch=0,
            grid=(num_blocks,),
            in_specs=[
                pl.BlockSpec((block_rows, V), lambda i: (i, 0)),
                pl.BlockSpec((block_rows, V), lambda i: (i, 0)),
                pl.BlockSpec((block_rows, 1), lambda i: (i, 0)),
            ],
            out_specs=pl.BlockSpec((1, 1, 128), lambda i: (i, 0, 0)),
        ),
        compiler_params=pltpu.CompilerParams(
            dimension_semantics=("parallel",),   # independent partial sums -> megacore safe
            vmem_limit_bytes=vmem_limit),
    )(s_flat, t_flat, tgt_flat)

    totals = jnp.sum(partials, axis=(0, 1))       # [128]
    kl_sum, clm_sum, clm_cnt = totals[0], totals[1], totals[2]

    # KLDivLoss(reduction='batchmean') divides by the (unpadded) flattened N = B*S.
    loss_ce = (kl_sum / N) * (temperature ** 2)
    loss_clm = clm_sum / jnp.maximum(clm_cnt, 1.0)

    # The original Distiller only GATES by alpha (total = loss_clm + loss_ce); it does not
    # scale by alpha_* — mirror that exactly.
    zero = jnp.float32(0.0)
    total_loss = zero
    if alpha_clm > 0:
        total_loss = total_loss + loss_clm
    else:
        loss_clm = zero
    if alpha_ce > 0:
        total_loss = total_loss + loss_ce
    else:
        loss_ce = zero
    return dict(loss_clm=loss_clm, loss_ce=loss_ce, total_loss=total_loss)


def _reference_loss(s_logits, t_logits, labels, temperature=2.0):
    """Pure-JAX reference replicating kl_torch + HF CLM loss."""
    B, S, V = s_logits.shape
    s = s_logits.reshape(-1, V).astype(jnp.float32)
    t = t_logits.reshape(-1, V).astype(jnp.float32)
    log_ps = jax.nn.log_softmax(s / temperature, axis=-1)
    log_pt = jax.nn.log_softmax(t / temperature, axis=-1)
    pt = jnp.exp(log_pt)
    loss_ce = jnp.sum(pt * (log_pt - log_ps)) / s.shape[0] * temperature ** 2

    shift_logits = s_logits[:, :-1, :].reshape(-1, V).astype(jnp.float32)
    shift_labels = labels[:, 1:].reshape(-1)
    lse = jax.nn.logsumexp(shift_logits, axis=-1)
    picked = jnp.take_along_axis(shift_logits, shift_labels[:, None], axis=-1)[:, 0]
    loss_clm = jnp.mean(lse - picked)
    return loss_clm, loss_ce, loss_clm + loss_ce


if __name__ == "__main__":
    # TODO(synk): teacher/student Qwen2 forwards not implemented; synthetic logits stand in
    # for student_outputs.logits / teacher_outputs.logits.
    B, S, V = 2, 16, 128
    key = jax.random.PRNGKey(0)
    k_s, k_t, k_l = jax.random.split(key, 3)
    s_logits = jax.random.normal(k_s, (B, S, V), dtype=jnp.float32) * 2.0
    t_logits = jax.random.normal(k_t, (B, S, V), dtype=jnp.float32) * 2.0
    labels = jax.random.randint(k_l, (B, S), 0, V, dtype=jnp.int32)

    ref_clm, ref_ce, ref_total = _reference_loss(s_logits, t_logits, labels, 2.0)

    # Auto-sized block (single block here).
    losses = distiller_compute_loss(s_logits, t_logits, labels,
                                    temperature=2.0, alpha_ce=0.7, alpha_clm=0.3)
    jax.block_until_ready(losses["total_loss"])
    assert jnp.allclose(losses["loss_clm"], ref_clm, rtol=1e-4, atol=1e-4)
    assert jnp.allclose(losses["loss_ce"], ref_ce, rtol=1e-4, atol=1e-4)
    assert jnp.allclose(losses["total_loss"], ref_total, rtol=1e-4, atol=1e-4)

    # Forced small block to exercise the multi-block + row-padding/masking path.
    losses_pad = distiller_compute_loss(s_logits, t_logits, labels,
                                        temperature=2.0, alpha_ce=0.7, alpha_clm=0.3,
                                        block_rows=24)
    jax.block_until_ready(losses_pad["total_loss"])
    assert jnp.allclose(losses_pad["loss_clm"], ref_clm, rtol=1e-4, atol=1e-4)
    assert jnp.allclose(losses_pad["loss_ce"], ref_ce, rtol=1e-4, atol=1e-4)
    assert jnp.allclose(losses_pad["total_loss"], ref_total, rtol=1e-4, atol=1e-4)

    print("KERNEL_OK")
</pallas_src>

<mosaic_0001>
module attributes {stable_mosaic.version = 11 : i64} {
  func.func @_distill_loss_kernel(%arg0: i32, %arg1: memref<32x128xf32, #tpu.memory_space<vmem>>, %arg2: memref<32x128xf32, #tpu.memory_space<vmem>>, %arg3: memref<32x1xi32, #tpu.memory_space<vmem>>, %arg4: memref<1x1x128xf32, #tpu.memory_space<vmem>>) attributes {dimension_semantics = [#tpu.dimension_semantics<parallel>], iteration_bounds = array<i64: 1>, scalar_prefetch = 0 : i64, scratch_operands = 0 : i64, tpu.core_type = #tpu.core_type<tc>, window_params = [{transform_indices = @transform_0, window_bounds = array<i64: 32, 128>}, {transform_indices = @transform_1, window_bounds = array<i64: 32, 128>}, {transform_indices = @transform_2, window_bounds = array<i64: 32, 1>}, {transform_indices = @transform_3, window_bounds = array<i64: 1, 1, 128>}]} {
    %c0 = arith.constant 0 : index
    %c0_0 = arith.constant 0 : index
    %0 = vector.load %arg1[%c0, %c0_0] : memref<32x128xf32, #tpu.memory_space<vmem>>, vector<32x128xf32>
    %c0_1 = arith.constant 0 : index
    %c0_2 = arith.constant 0 : index
    %1 = vector.load %arg2[%c0_1, %c0_2] : memref<32x128xf32, #tpu.memory_space<vmem>>, vector<32x128xf32>
    %c0_3 = arith.constant 0 : index
    %c0_4 = arith.constant 0 : index
    %2 = vector.load %arg3[%c0_3, %c0_4] : memref<32x1xi32, #tpu.memory_space<vmem>>, vector<32x1xi32>
    %c32_i32 = arith.constant 32 : i32
    %3 = arith.muli %arg0, %c32_i32 : i32
    %4 = tpu.iota {dimensions = array<i32: 0>} : vector<32x1xi32>
    %5 = vector.broadcast %3 : i32 to vector<32x1xi32>
    %6 = arith.addi %5, %4 : vector<32x1xi32>
    %c32_i32_5 = arith.constant 32 : i32
    %7 = vector.broadcast %c32_i32_5 : i32 to vector<32x1xi32>
    %8 = arith.cmpi slt, %6, %7 : vector<32x1xi32>
    %cst = arith.constant 5.000000e-01 : f32
    %9 = vector.broadcast %cst : f32 to vector<32x128xf32>
    %10 = arith.mulf %0, %9 : vector<32x128xf32>
    %cst_6 = arith.constant 5.000000e-01 : f32
    %11 = vector.broadcast %cst_6 : f32 to vector<32x128xf32>
    %12 = arith.mulf %1, %11 : vector<32x128xf32>
    %cst_7 = arith.constant dense<0xFF800000> : vector<32xf32>
    %13 = vector.multi_reduction <maximumf>, %12, %cst_7 [1] : vector<32x128xf32> to vector<32xf32>
    %14 = vector.shape_cast %13 : vector<32xf32> to vector<32x1xf32>
    %15 = vector.broadcast %14 : vector<32x1xf32> to vector<32x128xf32>
    %16 = arith.subf %12, %15 : vector<32x128xf32>
    %17 = math.exp %16 : vector<32x128xf32>
    %cst_8 = arith.constant dense<0.000000e+00> : vector<32xf32>
    %18 = vector.multi_reduction <add>, %17, %cst_8 [1] : vector<32x128xf32> to vector<32xf32>
    %19 = vector.shape_cast %18 : vector<32xf32> to vector<32x1xf32>
    %20 = vector.broadcast %14 : vector<32x1xf32> to vector<32x128xf32>
    %21 = arith.subf %12, %20 : vector<32x128xf32>
    %22 = math.log %19 : vector<32x1xf32>
    %23 = vector.broadcast %22 : vector<32x1xf32> to vector<32x128xf32>
    %24 = arith.subf %21, %23 : vector<32x128xf32>
    %cst_9 = arith.constant dense<0xFF800000> : vector<32xf32>
    %25 = vector.multi_reduction <maximumf>, %10, %cst_9 [1] : vector<32x128xf32> to vector<32xf32>
    %26 = vector.shape_cast %25 : vector<32xf32> to vector<32x1xf32>
    %27 = vector.broadcast %26 : vector<32x1xf32> to vector<32x128xf32>
    %28 = arith.subf %10, %27 : vector<32x128xf32>
    %29 = math.exp %28 : vector<32x128xf32>
    %cst_10 = arith.constant dense<0.000000e+00> : vector<32xf32>
    %30 = vector.multi_reduction <add>, %29, %cst_10 [1] : vector<32x128xf32> to vector<32xf32>
    %31 = vector.shape_cast %30 : vector<32xf32> to vector<32x1xf32>
    %32 = vector.broadcast %26 : vector<32x1xf32> to vector<32x128xf32>
    %33 = arith.subf %10, %32 : vector<32x128xf32>
    %34 = math.log %31 : vector<32x1xf32>
    %35 = vector.broadcast %34 : vector<32x1xf32> to vector<32x128xf32>
    %36 = arith.subf %33, %35 : vector<32x128xf32>
    %37 = arith.subf %24, %36 : vector<32x128xf32>
    %38 = arith.mulf %17, %37 : vector<32x128xf32>
    %cst_11 = arith.constant dense<0.000000e+00> : vector<32xf32>
    %39 = vector.multi_reduction <add>, %38, %cst_11 [1] : vector<32x128xf32> to vector<32xf32>
    %40 = vector.shape_cast %39 : vector<32xf32> to vector<32x1xf32>
    %41 = arith.divf %40, %19 : vector<32x1xf32>
    %cst_12 = arith.constant 0.000000e+00 : f32
    %42 = vector.broadcast %cst_12 : f32 to vector<32x1xf32>
    %43 = arith.select %8, %41, %42 : vector<32x1xi1>, vector<32x1xf32>
    %44 = vector.shape_cast %43 : vector<32x1xf32> to vector<1x32x1xf32>
    %cst_13 = arith.constant dense<0.000000e+00> : vector<1xf32>
    %45 = vector.multi_reduction <add>, %44, %cst_13 [1, 2] : vector<1x32x1xf32> to vector<1xf32>
    %46 = vector.shape_cast %45 : vector<1xf32> to vector<1x1x1xf32>
    %47 = vector.extract %46[0, 0, 0] : f32 from vector<1x1x1xf32>
    %cst_14 = arith.constant 2.000000e+00 : f32
    %48 = vector.broadcast %cst_14 : f32 to vector<32x1xf32>
    %49 = arith.mulf %48, %26 : vector<32x1xf32>
    %50 = arith.mulf %29, %29 : vector<32x128xf32>
    %cst_15 = arith.constant dense<0.000000e+00> : vector<32xf32>
    %51 = vector.multi_reduction <add>, %50, %cst_15 [1] : vector<32x128xf32> to vector<32xf32>
    %52 = vector.shape_cast %51 : vector<32xf32> to vector<32x1xf32>
    %53 = math.log %52 : vector<32x1xf32>
    %54 = arith.addf %53, %49 : vector<32x1xf32>
    %c-100_i32 = arith.constant -100 : i32
    %55 = vector.broadcast %c-100_i32 : i32 to vector<32x1xi32>
    %56 = arith.cmpi ne, %2, %55 : vector<32x1xi32>
    %57 = arith.andi %56, %8 : vector<32x1xi1>
    %c0_i32 = arith.constant 0 : i32
    %58 = vector.broadcast %c0_i32 : i32 to vector<32x1xi32>
    %59 = arith.select %57, %2, %58 : vector<32x1xi1>, vector<32x1xi32>
    %60 = tpu.iota {dimensions = array<i32: 1>} : vector<32x128xi32>
    %61 = vector.broadcast %59 : vector<32x1xi32> to vector<32x128xi32>
    %62 = arith.cmpi eq, %60, %61 : vector<32x128xi32>
    %cst_16 = arith.constant 0.000000e+00 : f32
    %63 = vector.broadcast %cst_16 : f32 to vector<32x128xf32>
    %64 = arith.select %62, %10, %63 : vector<32x128xi1>, vector<32x128xf32>
    %cst_17 = arith.constant dense<0.000000e+00> : vector<32xf32>
    %65 = vector.multi_reduction <add>, %64, %cst_17 [1] : vector<32x128xf32> to vector<32xf32>
    %66 = vector.shape_cast %65 : vector<32xf32> to vector<32x1xf32>
    %cst_18 = arith.constant 2.000000e+00 : f32
    %67 = vector.broadcast %cst_18 : f32 to vector<32x1xf32>
    %68 = arith.mulf %67, %66 : vector<32x1xf32>
    %69 = arith.subf %54, %68 : vector<32x1xf32>
    %cst_19 = arith.constant 0.000000e+00 : f32
    %70 = vector.broadcast %cst_19 : f32 to vector<32x1xf32>
    %71 = arith.select %57, %69, %70 : vector<32x1xi1>, vector<32x1xf32>
    %72 = vector.shape_cast %71 : vector<32x1xf32> to vector<1x32x1xf32>
    %cst_20 = arith.constant dense<0.000000e+00> : vector<1xf32>
    %73 = vector.multi_reduction <add>, %72, %cst_20 [1, 2] : vector<1x32x1xf32> to vector<1xf32>
    %74 = vector.shape_cast %73 : vector<1xf32> to vector<1x1x1xf32>
    %75 = vector.extract %74[0, 0, 0] : f32 from vector<1x1x1xf32>
    %76 = arith.extui %57 : vector<32x1xi1> to vector<32x1xi32>
    %77 = arith.sitofp %76 : vector<32x1xi32> to vector<32x1xf32>
    %78 = vector.shape_cast %77 : vector<32x1xf32> to vector<1x32x1xf32>
    %cst_21 = arith.constant dense<0.000000e+00> : vector<1xf32>
    %79 = vector.multi_reduction <add>, %78, %cst_21 [1, 2] : vector<1x32x1xf32> to vector<1xf32>
    %80 = vector.shape_cast %79 : vector<1xf32> to vector<1x1x1xf32>
    %81 = vector.extract %80[0, 0, 0] : f32 from vector<1x1x1xf32>
    %82 = tpu.iota {dimensions = array<i32: 2>} : vector<1x1x128xi32>
    %c0_i32_22 = arith.constant 0 : i32
    %83 = vector.broadcast %c0_i32_22 : i32 to vector<1x1x128xi32>
    %84 = arith.cmpi eq, %82, %83 : vector<1x1x128xi32>
    %cst_23 = arith.constant 0.000000e+00 : f32
    %85 = vector.broadcast %47 : f32 to vector<1x1x128xf32>
    %86 = vector.broadcast %cst_23 : f32 to vector<1x1x128xf32>
    %87 = arith.select %84, %85, %86 : vector<1x1x128xi1>, vector<1x1x128xf32>
    %c1_i32 = arith.constant 1 : i32
    %88 = vector.broadcast %c1_i32 : i32 to vector<1x1x128xi32>
    %89 = arith.cmpi eq, %82, %88 : vector<1x1x128xi32>
    %cst_24 = arith.constant 0.000000e+00 : f32
    %90 = vector.broadcast %75 : f32 to vector<1x1x128xf32>
    %91 = vector.broadcast %cst_24 : f32 to vector<1x1x128xf32>
    %92 = arith.select %89, %90, %91 : vector<1x1x128xi1>, vector<1x1x128xf32>
    %93 = arith.addf %87, %92 : vector<1x1x128xf32>
    %c2_i32 = arith.constant 2 : i32
    %94 = vector.broadcast %c2_i32 : i32 to vector<1x1x128xi32>
    %95 = arith.cmpi eq, %82, %94 : vector<1x1x128xi32>
    %cst_25 = arith.constant 0.000000e+00 : f32
    %96 = vector.broadcast %81 : f32 to vector<1x1x128xf32>
    %97 = vector.broadcast %cst_25 : f32 to vector<1x1x128xf32>
    %98 = arith.select %95, %96, %97 : vector<1x1x128xi1>, vector<1x1x128xf32>
    %99 = arith.addf %93, %98 : vector<1x1x128xf32>
    %c0_26 = arith.constant 0 : index
    %c0_27 = arith.constant 0 : index
    %c0_28 = arith.constant 0 : index
    %100 = vector.load %arg4[%c0_26, %c0_27, %c0_28] : memref<1x1x128xf32, #tpu.memory_space<vmem>>, vector<1x1x128xf32>
    tpu.vector_store %arg4[%c0_26, %c0_27, %c0_28], %99 {strides = array<i32>} : memref<1x1x128xf32, #tpu.memory_space<vmem>>, vector<1x1x128xf32>,
    return
  }
  func.func @transform_0(%arg0: i32) -> (i32, i32) {
    %c0_i32 = arith.constant 0 : i32
    %c0_i32_0 = arith.constant 0 : i32
    return %arg0, %c0_i32 : i32, i32
  }
  func.func @transform_1(%arg0: i32) -> (i32, i32) {
    %c0_i32 = arith.constant 0 : i32
    %c0_i32_0 = arith.constant 0 : i32
    return %arg0, %c0_i32 : i32, i32
  }
  func.func @transform_2(%arg0: i32) -> (i32, i32) {
    %c0_i32 = arith.constant 0 : i32
    %c0_i32_0 = arith.constant 0 : i32
    return %arg0, %c0_i32 : i32, i32
  }
  func.func @transform_3(%arg0: i32) -> (i32, i32, i32) {
    %c0_i32 = arith.constant 0 : i32
    %c0_i32_0 = arith.constant 0 : i32
    %c0_i32_1 = arith.constant 0 : i32
    return %arg0, %c0_i32, %c0_i32_0 : i32, i32, i32
  }
}

</mosaic_0001>

<bundles_post_ra>
// kernel: tpu_custom_call.1
= control target key start
LH: loop header
LB: loop body
LE: loop exit
PB: predicated region body
PF: predicated region fallthrough
CT: control target
= control target key end

     0   :  { %8 = vsyncpa [#allocation3], 0  ;;  %s799_s0 = inlined_call_operand.vmem [shape: f32[32,128], index: 0, kind: input, shape index: {}]   ;;  %s800_s1 = inlined_call_operand.hbm [shape: f32[32,128], index: 1, kind: input, shape index: {}]   ;;  %s801_s2 = inlined_call_operand.vmem [shape: s32[32,1], index: 2, kind: input, shape index: {}]   ;;  %s802_s3 = inlined_call_operand.hbm [shape: f32[1,1,128], index: 3, kind: output, shape index: {}]  }
   0x1   :  { %9 = vsyncpa [#allocation4], 0  ;;  %s16_s14 = sshll.u32 %s800_s1, 4  ;;  %s513_s15 = smov [#allocation2]   ;;  %s17_s14 = int_to_ptr.hbm [resolvable:$true] %s16_s14 }
   0x2   :  { %s18_s16 = sshll.u32 %s513_s15, 4  ;;  %s514_s17 = smov 128   ;;  %s19_s16 = int_to_ptr.vmem [resolvable:$true] %s18_s16 }
   0x3   :  { %s515_s18 = smov 8  }
   0x4   :  { %24 = dma.hbm_to_vmem [thread:$0]  %s17_s14, 512, %s19_s16, [#allocation3], %s514_s17, %s514_s17, %s515_s18  }
   0x5   :  { %509 = dma.done.wait [#allocation3], 512  }
   0x6   :  { %510 = vsyncadd [#allocation3], 4294966784  ;;  %v37_v0 = vld [vmem:[#allocation2 + $0x10] sm:$0xff]  ;;  %v35_v1 = vld [vmem:[#allocation2] sm:$0xff]  ;;  %v516_v23 = vmov 0   ;;  %v283_v63 = vlaneseq  ;;  %vm226_vm8 = vcmask 7168  }
   0x7   :  { %v31_v2 = vld [vmem:[%s799_s0] sm:$0xff]  ;;  %v64_v3 = vmul.f32 0.5, %v37_v0  ;;  %v62_v4 = vmul.f32 0.5, %v35_v1  ;;  %v36_v6 = vld [vmem:[#allocation2 + $0x8] sm:$0xff]  ;;  %v33_v7 = vld [vmem:[%s799_s0 + $0x10] sm:$0xff]  ;;  %411 = vset.pattern.permute.xlu2 %v516_v23  ;;  %410 = vset.pattern.permute.xlu1 %v516_v23  ;;  %s518_s8 = smov [#allocation5]  }
   0x8   :  { %v545_v5 = vmul.f32 0.5, %v31_v2  ;;  %v32_v8 = vld [vmem:[%s799_s0 + $0x8] sm:$0xff]  ;;  %v63_v9 = vmul.f32 0.5, %v36_v6  ;;  %v554_v10 = vmul.f32 0.5, %v33_v7  ;;  %v38_v12 = vld [vmem:[#allocation2 + $0x18] sm:$0xff]  ;;  %412 = vset.pattern.permute.xlu0 %v516_v23  ;;  %v623_v46 = vld [vmem:[%s801_s2] sm:$0xff] }
   0x9   :  { %70 = vmax.xlane.f32.xlu2 %v64_v3  ;;  %66 = vmax.xlane.f32.xlu0 %v62_v4  ;;  %v556_v11 = vmul.f32 0.5, %v32_v8  ;;  %v34_v13 = vld [vmem:[%s799_s0 + $0x18] sm:$0xff]  ;;  %v563_v14 = vmul.f32 0.5, %v38_v12  ;;  %v618_v45 = vld [vmem:[%s801_s2 + $0x8] sm:$0xff]  ;;  %vm271_vm1 = vcmp.ne.s32.totalorder %v623_v46, 4294967196  ;;  %v636_v49 = vld [vmem:[%s801_s2 + $0x10] sm:$0xff] }
   0xa   :  { %106 = vmax.xlane.f32.xlu1 %v545_v5  ;;  %v565_v15 = vmul.f32 0.5, %v34_v13  ;;  %vm272_vm0 = vcmp.ne.s32.totalorder %v618_v45, 4294967196  ;;  %v279_v48 = vsel %vm271_vm1, %v623_v46, 0  ;;  %vm273_vm2 = vcmp.ne.s32.totalorder %v636_v49, 4294967196  ;;  %v652_v57 = vld [vmem:[%s801_s2 + $0x18] sm:$0xff]  ;;  %s382_s9 = sshll.u32 %s518_s8, 4  ;;  %s383_s9 = int_to_ptr.vmem [resolvable:$true] %s382_s9 }
   0xb   :  { %v280_v47 = vsel %vm272_vm0, %v618_v45, 0  ;;  %v281_v50 = vsel %vm273_vm2, %v636_v49, 0  ;;  %vm274_vm3 = vcmp.ne.s32.totalorder %v652_v57, 4294967196  ;;  %v663_v0 = vand.u32 127, %v283_v63  ;;  %s384_s12 = sshll.u32 %s802_s3, 4  ;;  %s385_s12 = int_to_ptr.hbm [resolvable:$true] %s384_s12 }
   0xc   :  { %v282_v58 = vsel %vm274_vm3, %v652_v57, 0 }
  0x11   :  { %68 = vmax.xlane.f32.xlu0 %v63_v9  ;;  %110 = vmax.xlane.f32.xlu2 %v554_v10 }
  0x12   :  { %108 = vmax.xlane.f32.xlu1 %v556_v11 }
  0x19   :  { %72 = vmax.xlane.f32.xlu0 %v563_v14 }
  0x1a   :  { %112 = vmax.xlane.f32.xlu1 %v565_v15 }
  0x7c   :  { %v71_v16 = vpop.xlane.xlu2 %70  ;;  %v67_v17 = vpop.xlane.xlu0 %66 }
  0x7d   :  { %v569_v18 = vsub.f32 %v62_v4, %v67_v17  ;;  %v571_v19 = vpop.xlane.xlu1 %106  ;;  %v593_v30 = vsub.f32 %v64_v3, %v71_v16 }
  0x7e   :  { %v575_v20 = vsub.f32 %v545_v5, %v571_v19 }
  0x7f   :  { %v78_v21 = vmul.f32 1.442695, %v569_v18  ;;  %v82_v36 = vmul.f32 1.442695, %v593_v30 }
  0x80   :  { %v118_v22 = vmul.f32 1.442695, %v575_v20 }
  0x81   :  { %413 = vpow2.f32 %v78_v21 }
  0x82   :  { %415 = vpow2.f32 %v118_v22 }
  0x84   :  { %v69_v24 = vpop.xlane.xlu0 %68  ;;  %v579_v25 = vpop.xlane.xlu2 %110 }
  0x85   :  { %v581_v26 = vsub.f32 %v63_v9, %v69_v24  ;;  %v585_v27 = vsub.f32 %v554_v10, %v579_v25  ;;  %v587_v28 = vpop.xlane.xlu1 %108 }
  0x86   :  { %v591_v29 = vsub.f32 %v556_v11, %v587_v28 }
  0x87   :  { %v80_v31 = vmul.f32 1.442695, %v581_v26  ;;  %v122_v32 = vmul.f32 1.442695, %v585_v27  ;;  %v597_v33 = vpop.eup %413 }
  0x88   :  { %v120_v34 = vmul.f32 1.442695, %v591_v29  ;;  %v416_v35 = vpop.eup %415  ;;  %86 = vadd.xlane.f32.xlu2 %v597_v33 }
  0x89   :  { %417 = vpow2.f32 %v80_v31  ;;  %126 = vadd.xlane.f32.xlu1 %v416_v35  ;;  %v247_v55 = vmul.f32 %v416_v35, %v416_v35 }
  0x8a   :  { %419 = vpow2.f32 %v122_v32 }
  0x8b   :  { %421 = vpow2.f32 %v120_v34 }
  0x8c   :  { %423 = vpow2.f32 %v82_v36  ;;  %v73_v51 = vpop.xlane.xlu0 %72 }
  0x8d   :  { %v602_v37 = vpop.xlane.xlu1 %112  ;;  %v643_v52 = vsub.f32 %v563_v14, %v73_v51 }
  0x8e   :  { %v608_v39 = vsub.f32 %v565_v15, %v602_v37 }
  0x8f   :  { %v604_v38 = vpop.eup %417  ;;  %v84_v53 = vmul.f32 1.442695, %v643_v52 }
  0x90   :  { %v420_v40 = vpop.eup %419  ;;  %88 = vadd.xlane.f32.xlu0 %v604_v38  ;;  %v124_v42 = vmul.f32 1.442695, %v608_v39 }
  0x91   :  { %v422_v41 = vpop.eup %421  ;;  %130 = vadd.xlane.f32.xlu1 %v420_v40  ;;  %v249_v56 = vmul.f32 %v420_v40, %v420_v40 }
  0x92   :  { %128 = vadd.xlane.f32.xlu2 %v422_v41  ;;  %v612_v43 = vpop.eup %423  ;;  %425 = vpow2.f32 %v124_v42  ;;  %v248_v9 = vmul.f32 %v422_v41, %v422_v41 }
  0x93   :  { %427 = vpow2.f32 %v84_v53 }
  0x98   :  { %90 = vadd.xlane.f32.xlu0 %v612_v43  ;;  %v426_v44 = vpop.eup %425 }
  0x99   :  { %v646_v54 = vpop.eup %427  ;;  %v250_v14 = vmul.f32 %v426_v44, %v426_v44 }
  0xa0   :  { %132 = vadd.xlane.f32.xlu0 %v426_v44 }
  0xaa   :  { %289 = vperm.xlu2 %411, %v280_v47   ;;  %286 = vperm.xlu1 %410, %v279_v48  }
  0xb4   :  { %292 = vperm.xlu0 %412, %v281_v50  }
  0xd3   :  { %92 = vadd.xlane.f32.xlu2 %v646_v54 }
  0xd4   :  { %251 = vadd.xlane.f32.xlu1 %v247_v55 }
  0xde   :  { %255 = vadd.xlane.f32.xlu0 %v249_v56 }
  0xeb   :  { %295 = vperm.xlu2 %411, %v282_v58  }
  0xfb   :  { %v658_v59 = vpop.xlane.xlu2 %86 }
  0xfc   :  { %v127_v61 = vpop.xlane.xlu1 %126  ;;  %vm167_vm12 = vweird.f32 %v658_v59 }
  0xfd   :  { %429 = vlog2.f32 %v127_v61 }
  0xfe   :  { %431 = vlog2.f32 %v658_v59 }
 0x103   :  { %v660_v60 = vpop.xlane.xlu0 %88  ;;  %v430_v2 = vpop.eup %429 }
 0x104   :  { %v432_v4 = vpop.eup %431  ;;  %v131_v7 = vpop.xlane.xlu1 %130  ;;  %v135_v8 = vmul.f32 0.6931472, %v430_v2  ;;  %vm182_vm10 = vweird.f32 %v660_v60 }
 0x105   :  { %v129_v62 = vpop.xlane.xlu2 %128  ;;  %v95_v12 = vmul.f32 0.6931472, %v432_v4  ;;  %v244_v4 = vmul.f32 2.0, %v587_v28 }
 0x106   :  { %v142_v13 = vsub.f32 %v575_v20, %v135_v8 }
 0x107   :  { %v102_v16 = vsub.f32 %v569_v18, %v95_v12 }
 0x10b   :  { %v665_v3 = vpop.xlane.xlu0 %90 }
 0x10c   :  { %433 = vlog2.f32 %v665_v3  ;;  %vm197_vm13 = vweird.f32 %v665_v3 }
 0x10d   :  { %v290_v1 = vpop.permute.xlu2 %289  ;;  %435 = vlog2.f32 %v131_v7 }
 0x10e   :  { %vm298_vm4 = vcmp.eq.s32.totalorder %v663_v0, %v290_v1  ;;  %437 = vlog2.f32 %v660_v60 }
 0x10f   :  { %v302_v6 = vsel %vm298_vm4, %v556_v11, 0.0  ;;  %439 = vlog2.f32 %v129_v62  ;;  %v146_v11 = vsub.f32 %v102_v16, %v142_v13  ;;  %v243_v16 = vmul.f32 2.0, %v571_v19 }
 0x110   :  { %307 = vadd.xlane.f32.xlu1 %v302_v6 }
 0x111   :  { %v150_v32 = vmul.f32 %v597_v33, %v146_v11 }
 0x112   :  { %v434_v17 = vpop.eup %433 }
 0x113   :  { %v436_v21 = vpop.eup %435  ;;  %v99_v22 = vmul.f32 0.6931472, %v434_v17  ;;  %v133_v31 = vpop.xlane.xlu0 %132 }
 0x114   :  { %253 = vadd.xlane.f32.xlu2 %v248_v9  ;;  %v139_v23 = vmul.f32 0.6931472, %v436_v21  ;;  %v438_v34 = vpop.eup %437  ;;  %441 = vlog2.f32 %v133_v31 }
 0x115   :  { %v104_v20 = vsub.f32 %v593_v30, %v99_v22  ;;  %v440_v35 = vpop.eup %439  ;;  %v97_v42 = vmul.f32 0.6931472, %v438_v34 }
 0x116   :  { %v144_v36 = vsub.f32 %v585_v27, %v139_v23  ;;  %v137_v41 = vmul.f32 0.6931472, %v440_v35 }
 0x117   :  { %v103_v30 = vsub.f32 %v581_v26, %v97_v42 }
 0x118   :  { %257 = vadd.xlane.f32.xlu1 %v250_v14  ;;  %v148_v40 = vsub.f32 %v104_v20, %v144_v36  ;;  %v143_v48 = vsub.f32 %v591_v29, %v137_v41 }
 0x11a   :  { %v152_v47 = vmul.f32 %v612_v43, %v148_v40  ;;  %v147_v33 = vsub.f32 %v103_v30, %v143_v48  ;;  %v442_v43 = vpop.eup %441  ;;  %v173_v48 = vand.u32 2147483648, %v658_v59  ;;  %v203_v30 = vand.u32 2147483648, %v665_v3 }
 0x11b   :  { %v141_v51 = vmul.f32 0.6931472, %v442_v43  ;;  %v201_v43 = vand.u32 2147483647, %v665_v3 }
 0x11c   :  { %v287_v24 = vpop.permute.xlu1 %286  ;;  %v151_v27 = vmul.f32 %v604_v38, %v147_v33  ;;  %v188_v33 = vand.u32 2147483648, %v660_v60 }
 0x11d   :  { %vm297_vm5 = vcmp.eq.s32.totalorder %v663_v0, %v287_v24 }
 0x11e   :  { %v301_v18 = vsel %vm297_vm5, %v545_v5, 0.0 }
 0x11f   :  { %305 = vadd.xlane.f32.xlu2 %v301_v18 }
 0x120   :  { %154 = vadd.xlane.f32.xlu1 %v150_v32 }
 0x126   :  { %v293_v44 = vpop.permute.xlu0 %292 }
 0x127   :  { %vm299_vm6 = vcmp.eq.s32.totalorder %v663_v0, %v293_v44  ;;  %v246_v44 = vmul.f32 2.0, %v602_v37 }
 0x128   :  { %158 = vadd.xlane.f32.xlu1 %v152_v47  ;;  %v303_v5 = vsel %vm299_vm6, %v554_v10, 0.0  ;;  %v145_v10 = vsub.f32 %v608_v39, %v141_v51  ;;  %v171_v47 = vand.u32 2147483647, %v658_v59 }
 0x129   :  { %309 = vadd.xlane.f32.xlu2 %v303_v5 }
 0x12a   :  { %vm172_vm6 = vcmp.eq.f32.partialorder %v171_v47, 8.507059e+37 }
 0x131   :  { %156 = vadd.xlane.f32.xlu2 %v151_v27 }
 0x146   :  { %v684_v50 = vpop.xlane.xlu2 %92 }
 0x147   :  { %443 = vlog2.f32 %v684_v50  ;;  %v252_v61 = vpop.xlane.xlu1 %251 }
 0x148   :  { %445 = vrcp.f32 %v658_v59 }
 0x149   :  { %447 = vrcp.f32 %v660_v60 }
 0x14a   :  { %449 = vrcp.f32 %v665_v3 }
 0x14b   :  { %451 = vlog2.f32 %v252_v61 }
 0x14d   :  { %v444_v29 = vpop.eup %443 }
 0x14e   :  { %v296_v53 = vpop.permute.xlu2 %295  ;;  %v101_v26 = vmul.f32 0.6931472, %v444_v29 }
 0x14f   :  { %vm300_vm7 = vcmp.eq.s32.totalorder %v663_v0, %v296_v53 }
 0x150   :  { %v304_v55 = vsel %vm300_vm7, %v565_v15, 0.0  ;;  %v105_v38 = vsub.f32 %v643_v52, %v101_v26  ;;  %v695_v15 = vpop.eup %445  ;;  %v174_v26 = vor.u32 1.1754944e-38, %v173_v48  ;;  %vm202_vm7 = vcmp.eq.f32.partialorder %v201_v43, 8.507059e+37 }
 0x151   :  { %311 = vadd.xlane.f32.xlu0 %v304_v55  ;;  %v697_v39 = vpop.eup %447  ;;  %v163_v6 = vmul.f32 %v695_v15, %v658_v59  ;;  %vm168_vm9 = vweird.f32 %v695_v15  ;;  %v186_v59 = vand.u32 2147483647, %v660_v60  ;;  %v204_v55 = vor.u32 1.1754944e-38, %v203_v30 }
 0x152   :  { %v149_v56 = vsub.f32 %v105_v38, %v145_v10  ;;  %v699_v52 = vpop.eup %449  ;;  %v178_v9 = vmul.f32 %v697_v39, %v660_v60  ;;  %vm183_vm11 = vweird.f32 %v697_v39  ;;  %vm729_vm15 = vmor %vm167_vm12, %vm168_vm9  ;;  %v189_v10 = vor.u32 1.1754944e-38, %v188_v33 }
 0x153   :  { %v452_v1 = vpop.eup %451  ;;  %v193_v12 = vmul.f32 %v699_v52, %v665_v3  ;;  %v164_v11 = vsub.f32 1.0, %v163_v6  ;;  %vm198_vm14 = vweird.f32 %v699_v52  ;;  %vm744_vm4 = vmor %vm182_vm10, %vm183_vm11  ;;  %vm187_vm9 = vcmp.eq.f32.partialorder %v186_v59, 8.507059e+37 }
 0x154   :  { %v153_v58 = vmul.f32 %v646_v54, %v149_v56  ;;  %v260_v8 = vmul.f32 0.6931472, %v452_v1  ;;  %v179_v24 = vsub.f32 1.0, %v178_v9  ;;  %vm749_vm5 = vmor %vm197_vm13, %vm198_vm14  ;;  %v517_v56 = vmov 0.0  }
 0x155   :  { %v194_v23 = vsub.f32 1.0, %v193_v12  ;;  %v165_v20 = vmul.f32 %v695_v15, %v164_v11  ;;  %v394_v61 = vsel %vm271_vm1, 1.0, %v517_v56 }
 0x156   :  { %160 = vadd.xlane.f32.xlu2 %v153_v58  ;;  %v267_v22 = vadd.f32 %v260_v8, %v243_v16  ;;  %v180_v36 = vmul.f32 %v697_v39, %v179_v24  ;;  %v395_v58 = vsel %vm272_vm0, 1.0, %v517_v56  ;;  %v396_v8 = vsel %vm273_vm2, 1.0, %v517_v56 }
 0x157   :  { %v195_v35 = vmul.f32 %v699_v52, %v194_v23  ;;  %v166_v42 = vadd.f32 %v695_v15, %v165_v20  ;;  %v352_v12 = vsel %vm226_vm8, %v396_v8, 0.0  ;;  %v245_v20 = vmul.f32 2.0, %v579_v25 }
 0x158   :  { %v181_v51 = vadd.f32 %v697_v39, %v180_v36  ;;  %v216_v25 = vand.u32 2147483647, %v684_v50 }
 0x159   :  { %v196_v27 = vadd.f32 %v699_v52, %v195_v35  ;;  %v170_v3 = vsel %vm729_vm15, %v695_v15, %v166_v42 }
 0x15a   :  { %v185_v60 = vsel %vm744_vm4, %v697_v39, %v181_v51  ;;  %v350_v39 = vsel %vm226_vm8, %v395_v58, 0.0  ;;  %vm217_vm11 = vcmp.eq.f32.partialorder %v216_v25, 8.507059e+37 }
 0x15b   :  { %v200_v38 = vsel %vm749_vm5, %v699_v52, %v196_v27 }
 0x15c   :  { %v205_v1 = vsel %vm202_vm7, %v204_v55, %v200_v38 }
 0x183   :  { %v308_v62 = vpop.xlane.xlu1 %307 }
 0x184   :  { %v314_v13 = vmul.f32 2.0, %v308_v62  ;;  %v175_v62 = vsel %vm172_vm6, %v174_v26, %v170_v3 }
 0x187   :  { %v254_v63 = vpop.xlane.xlu2 %253 }
 0x188   :  { %453 = vlog2.f32 %v254_v63 }
 0x189   :  { %455 = vrcp.f32 %v684_v50 }
 0x18b   :  { %v701_v2 = vpop.xlane.xlu1 %257 }
 0x18e   :  { %v454_v54 = vpop.eup %453 }
 0x18f   :  { %v262_v7 = vmul.f32 0.6931472, %v454_v54  ;;  %v190_v54 = vsel %vm187_vm9, %v189_v10, %v185_v60  ;;  %v456_v23 = vpop.eup %455 }
 0x191   :  { %v268_v14 = vadd.f32 %v262_v7, %v244_v4  ;;  %v349_v7 = vsel %vm226_vm8, %v394_v61, 0.0 }
 0x192   :  { %v306_v21 = vpop.xlane.xlu2 %305  ;;  %v351_v45 = vadd.f32 %v350_v39, %v349_v7 }
 0x193   :  { %v318_v17 = vsub.f32 %v268_v14, %v314_v13  ;;  %v313_v28 = vmul.f32 2.0, %v306_v21  ;;  %v155_v19 = vpop.xlane.xlu1 %154  ;;  %v397_v14 = vsel %vm274_vm3, 1.0, %v517_v56 }
 0x194   :  { %v176_v15 = vmul.f32 %v175_v62, %v155_v19  ;;  %v353_v16 = vadd.f32 %v352_v12, %v351_v45  ;;  %v354_v21 = vsel %vm226_vm8, %v397_v14, 0.0 }
 0x195   :  { %v317_v31 = vsub.f32 %v267_v22, %v313_v28  ;;  %v322_v32 = vsel %vm272_vm0, %v318_v17, 0.0  ;;  %v256_v28 = vpop.xlane.xlu0 %255  ;;  %vm213_vm0 = vweird.f32 %v456_v23 }
 0x196   :  { %v326_v40 = vsel %vm226_vm8, %v322_v32, 0.0  ;;  %v227_v9 = vsel %vm226_vm8, %v176_v15, 0.0  ;;  %v355_v11 = vadd.f32 %v354_v21, %v353_v16  ;;  %457 = vlog2.f32 %v256_v28 }
 0x197   :  { %v321_v34 = vsel %vm271_vm1, %v317_v31, 0.0  ;;  %v208_v31 = vmul.f32 %v456_v23, %v684_v50  ;;  %459 = vlog2.f32 %v701_v2  ;;  %v218_v2 = vand.u32 2147483648, %v684_v50 }
 0x198   :  { %v325_v18 = vsel %vm226_vm8, %v321_v34, 0.0  ;;  %356 = vadd.xlane.f32.xlu2 %v355_v11  ;;  %vm212_vm1 = vweird.f32 %v684_v50 }
 0x199   :  { %v723_v41 = vadd.f32 %v326_v40, %v325_v18  ;;  %v209_v19 = vsub.f32 1.0, %v208_v31  ;;  %vm214_vm10 = vmor %vm212_vm1, %vm213_vm0  ;;  %v219_v37 = vor.u32 1.1754944e-38, %v218_v2 }
 0x19b   :  { %v159_v63 = vpop.xlane.xlu1 %158  ;;  %v210_v40 = vmul.f32 %v456_v23, %v209_v19 }
 0x19c   :  { %v310_v5 = vpop.xlane.xlu2 %309  ;;  %v206_v52 = vmul.f32 %v205_v1, %v159_v63  ;;  %v458_v24 = vpop.eup %457 }
 0x19d   :  { %v264_v32 = vmul.f32 0.6931472, %v458_v24  ;;  %v315_v34 = vmul.f32 2.0, %v310_v5  ;;  %v460_v35 = vpop.eup %459  ;;  %v211_v48 = vadd.f32 %v456_v23, %v210_v40 }
 0x19e   :  { %v230_v17 = vsel %vm226_vm8, %v206_v52, 0.0  ;;  %v266_v42 = vmul.f32 0.6931472, %v460_v35 }
 0x19f   :  { %v269_v18 = vadd.f32 %v264_v32, %v245_v20  ;;  %v215_v51 = vsel %vm214_vm10, %v456_v23, %v211_v48 }
 0x1a0   :  { %v270_v33 = vadd.f32 %v266_v42, %v246_v44  ;;  %v220_v59 = vsel %vm217_vm11, %v219_v37, %v215_v51 }
 0x1a1   :  { %v319_v36 = vsub.f32 %v269_v18, %v315_v34 }
 0x1a3   :  { %v323_v47 = vsel %vm273_vm2, %v319_v36, 0.0  ;;  %vm365_vm2 = vcmp.eq.s32.totalorder %v663_v0, 0 }
 0x1a4   :  { %v157_v4 = vpop.xlane.xlu2 %156  ;;  %v328_v5 = vsel %vm226_vm8, %v323_v47, 0.0 }
 0x1a5   :  { %v191_v6 = vmul.f32 %v190_v54, %v157_v4  ;;  %v329_v29 = vadd.f32 %v328_v5, %v723_v41 }
 0x1a7   :  { %v228_v46 = vsel %vm226_vm8, %v191_v6, 0.0 }
 0x1a8   :  { %v229_v13 = vadd.f32 %v228_v46, %v227_v9 }
 0x1aa   :  { %v231_v22 = vadd.f32 %v230_v17, %v229_v13 }
 0x1c4   :  { %v312_v30 = vpop.xlane.xlu0 %311 }
 0x1c5   :  { %v316_v27 = vmul.f32 2.0, %v312_v30 }
 0x1c7   :  { %v320_v43 = vsub.f32 %v270_v33, %v316_v27 }
 0x1c9   :  { %v324_v49 = vsel %vm274_vm3, %v320_v43, 0.0  ;;  %v161_v53 = vpop.xlane.xlu2 %160  ;;  %vm368_vm3 = vcmp.eq.s32.totalorder %v663_v0, 1 }
 0x1ca   :  { %v330_v3 = vsel %vm226_vm8, %v324_v49, 0.0  ;;  %v221_v26 = vmul.f32 %v220_v59, %v161_v53 }
 0x1cb   :  { %v331_v55 = vadd.f32 %v330_v3, %v329_v29 }
 0x1cc   :  { %v232_v50 = vsel %vm226_vm8, %v221_v26, 0.0  ;;  %vm372_vm8 = vcmp.eq.s32.totalorder %v663_v0, 2 }
 0x1cd   :  { %332 = vadd.xlane.f32.xlu1 %v331_v55  ;;  %v233_v10 = vadd.f32 %v232_v50, %v231_v22 }
 0x1cf   :  { %234 = vadd.xlane.f32.xlu0 %v233_v10 }
 0x20b   :  { %v357_v38 = vpop.xlane.xlu2 %356 }
 0x20c   :  { %v358_v60 = vrot.slane %v357_v38, 4 }
 0x20e   :  { %v359_v56 = vadd.f32 %v358_v60, %v357_v38 }
 0x210   :  { %v360_v63 = vrot.slane %v359_v56, 2 }
 0x212   :  { %v361_v4 = vadd.f32 %v360_v63, %v359_v56 }
 0x214   :  { %v362_v8 = vrot.slane %v361_v4, 1 }
 0x216   :  { %v363_v46 = vadd.f32 %v362_v8, %v361_v4 }
 0x240   :  { %v333_v58 = vpop.xlane.xlu1 %332 }
 0x241   :  { %v334_v61 = vrot.slane %v333_v58, 4 }
 0x242   :  { %v235_v62 = vpop.xlane.xlu0 %234 }
 0x243   :  { %v335_v57 = vadd.f32 %v334_v61, %v333_v58  ;;  %v236_v41 = vrot.slane %v235_v62, 4 }
 0x245   :  { %v336_v15 = vrot.slane %v335_v57, 2  ;;  %v237_v1 = vadd.f32 %v236_v41, %v235_v62 }
 0x247   :  { %v337_v54 = vadd.f32 %v336_v15, %v335_v57  ;;  %v238_v52 = vrot.slane %v237_v1, 2 }
 0x249   :  { %v239_v6 = vadd.f32 %v238_v52, %v237_v1  ;;  %v338_v7 = vrot.slane %v337_v54, 1 }
 0x24b   :  { %v240_v39 = vrot.slane %v239_v6, 1  ;;  %v339_v9 = vadd.f32 %v338_v7, %v337_v54 }
 0x24d   :  { %v241_v45 = vadd.f32 %v240_v39, %v239_v6 }
 0x24f   :  { %398 = vpush %v241_v45 }
 0x250   :  { %400 = vpush %v339_v9 }
 0x251   :  { %402 = vpush %v363_v46 }
 0x280   :  { %s399_s2 = spop %398 }
 0x281   :  { %v366_v12 = vstv %s399_s2  ;;  %s401_s6 = spop %400 }
 0x282   :  { %v367_v13 = vsel %vm365_vm2, %v366_v12, 0.0  ;;  %v369_v14 = vstv %s401_s6  ;;  %s403_s7 = spop %402 }
 0x283   :  { %v370_v16 = vsel %vm368_vm3, %v369_v14, 0.0  ;;  %v373_v17 = vstv %s403_s7 }
 0x284   :  { %v371_v21 = vadd.f32 %v370_v16, %v367_v13  ;;  %v374_v11 = vsel %vm372_vm8, %v373_v17, 0.0 }
 0x286   :  { %v375_v22 = vadd.f32 %v374_v11, %v371_v21 }
 0x288   :  { %376 = vst [vmem:[#allocation5] sm:$0x1] %v375_v22 }
 0x289   :  { %387 = dma.vmem_to_hbm [thread:$0]  %s383_s9, 16, %s385_s12, [#allocation4]  }
 0x28a   :  { %511 = dma.done.wait [#allocation4], 16  }
 0x28b   :  { %512 = vsyncadd [#allocation4], 4294967280 }
 0x28c   :  { %392 = vsyncpa [#allocation3], 1 }
 0x28d   :  { %393 = vsyncpa [#allocation4], 1 }

</bundles_post_ra>
